<compile_context>
chip_gen: v7x
topology: tpu7x:2x2x1
jax: 0.10.0
libtpu: 0.0.40
codegen_flags: <defaults>
</compile_context>

<pallas_src>
import jax
import jax.numpy as jnp
from jax.experimental import pallas as pl
from jax.experimental.pallas import tpu as pltpu


def _intensity_bg_kernel(i_ref, bg_ref, psf_ref, mu_ref):
    # i_ref / bg_ref : VMEM tiles (TB, 1)
    # psf_ref        : VMEM tile  (TB, H*W)   (lane-dense)
    # mu_ref         : VMEM tile  (TB, H*W)
    # Single fused VPU expression: broadcast (TB,1) across lanes, FMA, store.
    mu_ref[...] = i_ref[...] * psf_ref[...] + bg_ref[...]


def intensity_and_bg_model(params, psf, *, block_b=512):
    """params: (B, 2) float32, psf: (B, H, W) float32 -> (mu (B,H,W), deriv (B,H,W,2))."""
    B, H, W = psf.shape
    HW = H * W

    psf_flat = psf.reshape(B, HW)
    i_col = params[:, 0:1].astype(psf.dtype)   # (B, 1)
    bg_col = params[:, 1:2].astype(psf.dtype)  # (B, 1)

    if B <= block_b:
        # Small batch: a single block covering the full batch dim is always a
        # legal block shape (block dim == full array dim).
        tb = B
        b_padded = B
    else:
        # Large batch: tile in chunks of block_b rows (multiple of 8 so the
        # sublane constraint holds), padding the batch if needed.
        tb = block_b
        b_padded = pl.cdiv(B, tb) * tb
        if b_padded != B:
            pad = b_padded - B
            psf_flat = jnp.pad(psf_flat, ((0, pad), (0, 0)))
            i_col = jnp.pad(i_col, ((0, pad), (0, 0)))
            bg_col = jnp.pad(bg_col, ((0, pad), (0, 0)))

    grid = (b_padded // tb,)

    mu_flat = pl.pallas_call(
        _intensity_bg_kernel,
        out_shape=jax.ShapeDtypeStruct((b_padded, HW), psf.dtype),
        grid=grid,
        in_specs=[
            pl.BlockSpec((tb, 1), lambda i: (i, 0)),    # intensity column
            pl.BlockSpec((tb, 1), lambda i: (i, 0)),    # background column
            pl.BlockSpec((tb, HW), lambda i: (i, 0)),   # psf, lane-dense slab
        ],
        out_specs=pl.BlockSpec((tb, HW), lambda i: (i, 0)),
        compiler_params=pltpu.CompilerParams(
            # Batch-tile axis is independent -> shard across TensorCores
            # (2 TCs on v7x) when the grid has >= 2 steps.
            dimension_semantics=("parallel",),
        ),
    )(i_col, bg_col, psf_flat)

    mu = mu_flat[:B].reshape(B, H, W)

    # deriv[..., 0] = psf, deriv[..., 1] = 1.0 — pure data rearrangement of an
    # existing input plus a constant; let XLA form it directly (no kernel HBM
    # traffic, no post-kernel transpose).
    deriv = jnp.stack((psf, jnp.ones_like(psf)), axis=-1)
    return mu, deriv


def _reference(params, psf):
    I = params[:, 0]
    bg = params[:, 1]
    mu = I[:, None, None] * psf + bg[:, None, None]
    deriv = jnp.stack((psf, jnp.ones_like(psf)), axis=-1)
    return mu, deriv


if __name__ == "__main__":
    key = jax.random.PRNGKey(0)
    k_params, k_psf = jax.random.split(key)

    # Primary small test consistent with the module (B emitters, HxW psf).
    B, H, W = 2, 16, 16
    params = jax.random.uniform(k_params, (B, 2), dtype=jnp.float32,
                                minval=0.5, maxval=5.0)
    psf = jax.random.uniform(k_psf, (B, H, W), dtype=jnp.float32)

    mu, deriv = jax.jit(intensity_and_bg_model)(params, psf)
    jax.block_until_ready((mu, deriv))

    mu_ref, deriv_ref = _reference(params, psf)
    assert mu.shape == (B, H, W) and deriv.shape == (B, H, W, 2)
    assert jnp.allclose(mu, mu_ref, atol=1e-6, rtol=1e-6)
    assert jnp.allclose(deriv, deriv_ref, atol=1e-6, rtol=1e-6)

    # Secondary check exercising the multi-tile + padding path (B > block_b).
    k2_params, k2_psf = jax.random.split(jax.random.PRNGKey(1))
    B2 = 20
    params2 = jax.random.uniform(k2_params, (B2, 2), dtype=jnp.float32,
                                 minval=0.5, maxval=5.0)
    psf2 = jax.random.uniform(k2_psf, (B2, H, W), dtype=jnp.float32)
    mu2, deriv2 = jax.jit(
        lambda p, s: intensity_and_bg_model(p, s, block_b=8))(params2, psf2)
    jax.block_until_ready((mu2, deriv2))
    mu2_ref, deriv2_ref = _reference(params2, psf2)
    assert jnp.allclose(mu2, mu2_ref, atol=1e-6, rtol=1e-6)
    assert jnp.allclose(deriv2, deriv2_ref, atol=1e-6, rtol=1e-6)

    print("KERNEL_OK")
</pallas_src>

<mosaic_0001>
module attributes {stable_mosaic.version = 11 : i64} {
  func.func @_intensity_bg_kernel(%arg0: i32, %arg1: memref<2x1xf32, #tpu.memory_space<vmem>>, %arg2: memref<2x1xf32, #tpu.memory_space<vmem>>, %arg3: memref<2x256xf32, #tpu.memory_space<vmem>>, %arg4: memref<2x256xf32, #tpu.memory_space<vmem>>) attributes {dimension_semantics = [#tpu.dimension_semantics<parallel>], iteration_bounds = array<i64: 1>, scalar_prefetch = 0 : i64, scratch_operands = 0 : i64, tpu.core_type = #tpu.core_type<tc>, window_params = [{transform_indices = @transform_0, window_bounds = array<i64: 2, 1>}, {transform_indices = @transform_1, window_bounds = array<i64: 2, 1>}, {transform_indices = @transform_2, window_bounds = array<i64: 2, 256>}, {transform_indices = @transform_3, window_bounds = array<i64: 2, 256>}]} {
    %c0 = arith.constant 0 : index
    %c0_0 = arith.constant 0 : index
    %0 = vector.load %arg1[%c0, %c0_0] : memref<2x1xf32, #tpu.memory_space<vmem>>, vector<2x1xf32>
    %c0_1 = arith.constant 0 : index
    %c0_2 = arith.constant 0 : index
    %1 = vector.load %arg3[%c0_1, %c0_2] : memref<2x256xf32, #tpu.memory_space<vmem>>, vector<2x256xf32>
    %2 = vector.broadcast %0 : vector<2x1xf32> to vector<2x256xf32>
    %3 = arith.mulf %2, %1 : vector<2x256xf32>
    %c0_3 = arith.constant 0 : index
    %c0_4 = arith.constant 0 : index
    %4 = vector.load %arg2[%c0_3, %c0_4] : memref<2x1xf32, #tpu.memory_space<vmem>>, vector<2x1xf32>
    %5 = vector.broadcast %4 : vector<2x1xf32> to vector<2x256xf32>
    %6 = arith.addf %3, %5 : vector<2x256xf32>
    %c0_5 = arith.constant 0 : index
    %c0_6 = arith.constant 0 : index
    %7 = vector.load %arg4[%c0_5, %c0_6] : memref<2x256xf32, #tpu.memory_space<vmem>>, vector<2x256xf32>
    tpu.vector_store %arg4[%c0_5, %c0_6], %6 {strides = array<i32>} : memref<2x256xf32, #tpu.memory_space<vmem>>, vector<2x256xf32>,
    return
  }
  func.func @transform_0(%arg0: i32) -> (i32, i32) {
    %c0_i32 = arith.constant 0 : i32
    %c0_i32_0 = arith.constant 0 : i32
    return %arg0, %c0_i32 : i32, i32
  }
  func.func @transform_1(%arg0: i32) -> (i32, i32) {
    %c0_i32 = arith.constant 0 : i32
    %c0_i32_0 = arith.constant 0 : i32
    return %arg0, %c0_i32 : i32, i32
  }
  func.func @transform_2(%arg0: i32) -> (i32, i32) {
    %c0_i32 = arith.constant 0 : i32
    %c0_i32_0 = arith.constant 0 : i32
    return %arg0, %c0_i32 : i32, i32
  }
  func.func @transform_3(%arg0: i32) -> (i32, i32) {
    %c0_i32 = arith.constant 0 : i32
    %c0_i32_0 = arith.constant 0 : i32
    return %arg0, %c0_i32 : i32, i32
  }
}

</mosaic_0001>

<bundles_post_ra>
// kernel: intensity_and_bg_model.1
= control target key start
LH: loop header
LB: loop body
LE: loop exit
PB: predicated region body
PF: predicated region fallthrough
CT: control target
= control target key end

     0   :  { %v62_v0 = vmov 0   ;;  %s95_s0 = inlined_call_operand.vmem [shape: f32[2,1], index: 0, kind: input, shape index: {}]   ;;  %s96_s1 = inlined_call_operand.vmem [shape: f32[2,1], index: 1, kind: input, shape index: {}]   ;;  %s97_s2 = inlined_call_operand.vmem [shape: f32[2,256], index: 2, kind: input, shape index: {}]   ;;  %s98_s3 = inlined_call_operand.vmem [shape: f32[2,256], index: 3, kind: output, shape index: {}]  }
   0x1   :  { %61 = vset.pattern.permute.xlu0 %v62_v0  ;;  %v14_v1 = vld [vmem:[%s95_s0] sm:$0x3] }
   0x2   :  { %18 = vperm.xlu0 %61, %v14_v1   ;;  %v34_v2 = vld [vmem:[%s96_s1] sm:$0x3] }
   0x3   :  { %v58_v3 = vld.sshfl [vmem:[%s97_s2] sm:$0x33 pattern:$0x76325410] }
   0x4   :  { %v29_v4 = vcombine.high %v58_v3, %v58_v3 }
   0x6   :  { %37 = vperm.xlu0 %61, %v34_v2  }
  0x81   :  { %v19_v5 = vpop.permute.xlu0 %18 }
  0x82   :  { %v32_v6 = vmul.f32 %v58_v3, %v19_v5  ;;  %v33_v7 = vmul.f32 %v29_v4, %v19_v5 }
  0x85   :  { %v38_v8 = vpop.permute.xlu0 %37 }
  0x86   :  { %v40_v9 = vadd.f32 %v38_v8, %v32_v6  ;;  %v41_v10 = vadd.f32 %v38_v8, %v33_v7 }
  0x88   :  { %v44_v11 = vcombine.low %v40_v9, %v41_v10 }
  0x8a   :  { %59 = vst.sshfl [vmem:[%s98_s3] sm:$0x33 pattern:$0x76325410] %v44_v11 }

</bundles_post_ra>
